<compile_context>
chip_gen: v7x
topology: tpu7x:2x2x1
jax: 0.10.0
libtpu: 0.0.40
codegen_flags: <defaults>
</compile_context>

<pallas_src>
import jax
import jax.numpy as jnp
import numpy as np
from jax.experimental import pallas as pl
from jax.experimental.pallas import tpu as pltpu


def attention_layer_kernel(hs_ref, ht_ref, mask_ref, wa_ref, wrc_ref, wrh_ref, br_ref,
                           out_ref, q_sc, m_sc, l_sc, acc_sc):
    # hs_ref  : [S_t, B_t, H]  encoder states tile (bf16), module-native seq-major layout
    # ht_ref  : [B_t, H]       decoder state (f32)
    # mask_ref: [S_t, B_t]     0/1 context mask tile (f32)
    # wa_ref  : [H, H]         W_a.weight  ([out, in] nn.Linear layout)
    # wrc_ref : [H, H]         W_r[:, :H].T  (columns acting on c_t)
    # wrh_ref : [H, H]         W_r[:, H:].T  (columns acting on h_t)
    # br_ref  : [1, H]         W_r bias
    # scratch : q_sc [B_t,H], m_sc/l_sc [1,B_t], acc_sc [B_t,H]  (f32, persist over s)
    s_idx = pl.program_id(1)

    @pl.when(s_idx == 0)
    def _init():
        # q = h_t @ W_a  (== W_a^T h_t).  The <b_a, h_t> bias is softmax-invariant
        # (constant over s), so it is dropped entirely.
        q_sc[...] = jnp.dot(ht_ref[...], wa_ref[...], preferred_element_type=jnp.float32)
        m_sc[...] = jnp.full_like(m_sc, -jnp.inf)
        l_sc[...] = jnp.zeros_like(l_sc)
        acc_sc[...] = jnp.zeros_like(acc_sc)

    hs = hs_ref[...].astype(jnp.float32)                          # [S_t, B_t, H]

    # scores[s, b] = <h_s[s, b, :], q[b, :]>  (VPU mul + lane reduce over H).
    scores = jnp.sum(hs * q_sc[...][None, :, :], axis=-1)         # [S_t, B_t]
    scores = jnp.where(mask_ref[...] > 0.0, scores, jnp.float32(-1e30))

    # Online (flash-style) softmax update over the sequence axis.
    m_prev = m_sc[...]                                            # [1, B_t]
    m_new = jnp.maximum(m_prev, jnp.max(scores, axis=0, keepdims=True))
    alpha = jnp.exp(m_prev - m_new)                               # [1, B_t]
    p = jnp.exp(scores - m_new)                                   # [S_t, B_t]
    l_sc[...] = alpha * l_sc[...] + jnp.sum(p, axis=0, keepdims=True)
    acc_sc[...] = (jnp.transpose(alpha) * acc_sc[...]
                   + jnp.sum(p[:, :, None] * hs, axis=0))         # [B_t, H]
    m_sc[...] = m_new

    @pl.when(s_idx == pl.num_programs(1) - 1)
    def _finalize():
        inv_l = jnp.transpose(pl.reciprocal(l_sc[...], approx=True))   # [B_t, 1]
        c_t = acc_sc[...] * inv_l                                       # [B_t, H]
        # tanh(Linear_{2H->H}(cat(c_t, h_t))) without the concat: split column blocks.
        out = (jnp.dot(c_t, wrc_ref[...], preferred_element_type=jnp.float32)
               + jnp.dot(ht_ref[...], wrh_ref[...], preferred_element_type=jnp.float32)
               + br_ref[...])
        out_ref[...] = jnp.tanh(out).astype(out_ref.dtype)


def attention_layer(hs, ht, mask, wa, ba, wr, br, *, s_tile=None, b_tile=None,
                    vmem_limit_bytes=32 << 20):
    """hs: [S,B,H] (PyTorch seq-major), ht: [B,H], mask: [B,S] 0/1;
    wa: [H,H], ba: [H], wr: [H,2H], br: [H] in nn.Linear ([out,in]) layouts."""
    S, B, H = hs.shape
    del ba  # softmax-invariant bias: dead compute / dead DMA (output unchanged)

    # ---- host-side one-time prep (tiny; no transpose or copy of hs itself) ----
    hs_bf16 = hs.astype(jnp.bfloat16)        # halve HBM traffic of the dominant tensor
    ht = ht.astype(jnp.float32)
    mask_sb = mask.astype(jnp.float32).T     # [S, B], the module's own log-mask layout
    wa = wa.astype(jnp.float32)
    wrc = wr[:, :H].T.astype(jnp.float32)    # acts on c_t
    wrh = wr[:, H:].T.astype(jnp.float32)    # acts on h_t
    br2 = br[None, :].astype(jnp.float32)

    # ---- generation-safe tile sizing ----
    if b_tile is None:
        # sublane-aligned batch tile when possible; otherwise take the full batch.
        b_tile = 8 if (B > 8 and B % 8 == 0) else B
    assert B % b_tile == 0, "b_tile must divide B"
    if s_tile is None:
        # hs tile is double-buffered by the pipeline: 2 * s_tile * b_tile * H * 2B.
        # 8 MiB budget fits v7x's 32 MiB scoped VMEM (and v5e once the limit is raised).
        budget = 8 << 20
        s_tile = min(S, max(1, budget // (2 * b_tile * H * 2)))
        while S % s_tile:
            s_tile -= 1
    assert S % s_tile == 0, "s_tile must divide S"
    # NOTE: at real sizes keep s_tile a multiple of 8 (mask sublane) and S_tile*H
    # lane-dense; at toy shapes the full-dimension blocks satisfy the (8,128) rule.

    grid = (B // b_tile, S // s_tile)
    const = lambda b, s: (0, 0)   # weights: DMA'd once, resident across the grid

    return pl.pallas_call(
        attention_layer_kernel,
        out_shape=jax.ShapeDtypeStruct((B, H), jnp.float32),
        grid_spec=pltpu.PrefetchScalarGridSpec(
            num_scalar_prefetch=0,
            grid=grid,
            in_specs=[
                pl.BlockSpec((s_tile, b_tile, H), lambda b, s: (s, b, 0)),   # hs
                pl.BlockSpec((b_tile, H), lambda b, s: (b, 0)),              # ht
                pl.BlockSpec((s_tile, b_tile), lambda b, s: (s, b)),         # mask
                pl.BlockSpec((H, H), const),                                 # W_a
                pl.BlockSpec((H, H), const),                                 # W_r (c_t cols)
                pl.BlockSpec((H, H), const),                                 # W_r (h_t cols)
                pl.BlockSpec((1, H), const),                                 # b_r
            ],
            out_specs=pl.BlockSpec((b_tile, H), lambda b, s: (b, 0)),
            scratch_shapes=[
                pltpu.VMEM((b_tile, H), jnp.float32),   # q = h_t @ W_a
                pltpu.VMEM((1, b_tile), jnp.float32),   # running max m
                pltpu.VMEM((1, b_tile), jnp.float32),   # running denom l
                pltpu.VMEM((b_tile, H), jnp.float32),   # unnormalized context acc
            ]),
        compiler_params=pltpu.CompilerParams(
            dimension_semantics=("parallel", "arbitrary"),   # batch axis -> v7x 2 TCs
            vmem_limit_bytes=vmem_limit_bytes),
    )(hs_bf16, ht, mask_sb, wa, wrc, wrh, br2)


def attention_layer_ref(hs, ht, mask, wa, ba, wr, br):
    """Pure-numpy reference mirroring the PyTorch module."""
    hs = np.asarray(hs, np.float64)
    ht = np.asarray(ht, np.float64)
    mask = np.asarray(mask, np.float64)
    wa, ba, wr, br = (np.asarray(a, np.float64) for a in (wa, ba, wr, br))
    proj = hs @ wa.T + ba                              # [S, B, H]
    scores = np.einsum('sbh,bh->sb', proj, ht)         # [S, B]
    with np.errstate(divide='ignore'):
        scores = scores + np.log(mask).T
    m = scores.max(axis=0, keepdims=True)
    lse = m + np.log(np.exp(scores - m).sum(axis=0, keepdims=True))
    a_t = np.exp(scores - lse)
    c_t = np.einsum('sb,sbi->bi', a_t, hs)
    cat = np.concatenate([c_t, ht], axis=1)
    return np.tanh(cat @ wr.T + br)


if __name__ == "__main__":
    S, B, H = 16, 2, 32
    key = jax.random.PRNGKey(0)
    k_hs, k_ht, k_wa, k_ba, k_wr, k_br = jax.random.split(key, 6)

    hs = jax.random.normal(k_hs, (S, B, H), dtype=jnp.float32)
    ht = jax.random.normal(k_ht, (B, H), dtype=jnp.float32)

    # 0/1 context mask [B, S]: batch 0 fully valid, batch 1 valid for first 11 steps
    lengths = np.array([16, 11])
    mask_np = (np.arange(S)[None, :] < lengths[:, None]).astype(np.float32)
    mask = jnp.asarray(mask_np)

    # Deterministic "nn.Linear"-shaped parameters (weight: [out, in], bias: [out])
    bound_a = 1.0 / np.sqrt(H)
    bound_r = 1.0 / np.sqrt(2 * H)
    wa = jax.random.uniform(k_wa, (H, H), jnp.float32, -bound_a, bound_a)
    ba = jax.random.uniform(k_ba, (H,), jnp.float32, -bound_a, bound_a)
    wr = jax.random.uniform(k_wr, (H, 2 * H), jnp.float32, -bound_r, bound_r)
    br = jax.random.uniform(k_br, (H,), jnp.float32, -bound_r, bound_r)

    # s_tile=8 -> grid (1, 2): exercises the multi-tile online-softmax path at toy size.
    out = attention_layer(hs, ht, mask, wa, ba, wr, br, s_tile=8)
    out = jax.block_until_ready(out)

    ref = attention_layer_ref(hs, ht, mask, wa, ba, wr, br)
    # bf16 h_s storage + approx reciprocal -> ~1e-2 tolerance.
    np.testing.assert_allclose(np.asarray(out), ref, rtol=2e-2, atol=2e-2)

    print("KERNEL_OK")
</pallas_src>

<mosaic_0001>
module attributes {stable_mosaic.version = 11 : i64} {
  func.func @attention_layer_kernel(%arg0: i32, %arg1: i32, %arg2: memref<8x2x32xbf16, #tpu.memory_space<vmem>>, %arg3: memref<2x32xf32, #tpu.memory_space<vmem>>, %arg4: memref<8x2xf32, #tpu.memory_space<vmem>>, %arg5: memref<32x32xf32, #tpu.memory_space<vmem>>, %arg6: memref<32x32xf32, #tpu.memory_space<vmem>>, %arg7: memref<32x32xf32, #tpu.memory_space<vmem>>, %arg8: memref<1x32xf32, #tpu.memory_space<vmem>>, %arg9: memref<2x32xf32, #tpu.memory_space<vmem>>, %arg10: memref<2x32xf32, #tpu.memory_space<vmem>>, %arg11: memref<1x2xf32, #tpu.memory_space<vmem>>, %arg12: memref<1x2xf32, #tpu.memory_space<vmem>>, %arg13: memref<2x32xf32, #tpu.memory_space<vmem>>) attributes {dimension_semantics = [#tpu.dimension_semantics<parallel>, #tpu.dimension_semantics<arbitrary>], iteration_bounds = array<i64: 1, 2>, scalar_prefetch = 0 : i64, scratch_operands = 4 : i64, tpu.core_type = #tpu.core_type<tc>, window_params = [{transform_indices = @transform_0, window_bounds = array<i64: 8, 2, 32>}, {transform_indices = @transform_1, window_bounds = array<i64: 2, 32>}, {transform_indices = @transform_2, window_bounds = array<i64: 8, 2>}, {pipeline_mode = #tpu.pipeline_mode<synchronous>, transform_indices = @transform_3, window_bounds = array<i64: 32, 32>}, {pipeline_mode = #tpu.pipeline_mode<synchronous>, transform_indices = @transform_4, window_bounds = array<i64: 32, 32>}, {pipeline_mode = #tpu.pipeline_mode<synchronous>, transform_indices = @transform_5, window_bounds = array<i64: 32, 32>}, {pipeline_mode = #tpu.pipeline_mode<synchronous>, transform_indices = @transform_6, window_bounds = array<i64: 1, 32>}, {transform_indices = @transform_7, window_bounds = array<i64: 2, 32>}]} {
    %c0_i32 = arith.constant 0 : i32
    %0 = arith.cmpi eq, %arg1, %c0_i32 : i32
    %1 = arith.extui %0 : i1 to i32
    %c0_i32_0 = arith.constant 0 : i32
    %2 = arith.cmpi ne, %1, %c0_i32_0 : i32
    scf.if %2 {
      %c0_25 = arith.constant 0 : index
      %c0_26 = arith.constant 0 : index
      %44 = vector.load %arg3[%c0_25, %c0_26] : memref<2x32xf32, #tpu.memory_space<vmem>>, vector<2x32xf32>
      %c0_27 = arith.constant 0 : index
      %c0_28 = arith.constant 0 : index
      %45 = vector.load %arg5[%c0_27, %c0_28] : memref<32x32xf32, #tpu.memory_space<vmem>>, vector<32x32xf32>
      %cst_29 = arith.constant dense<0.000000e+00> : vector<2x32xf32>
      %46 = tpu.matmul %44, %45, %cst_29 {dimension_numbers = #tpu.dot_dimension_numbers<[1], [0], [0], [1], [0, 0, 1, 1], [], []>} : vector<2x32xf32>, vector<32x32xf32>, vector<2x32xf32> -> vector<2x32xf32>
      %c0_30 = arith.constant 0 : index
      %c0_31 = arith.constant 0 : index
      %47 = vector.load %arg10[%c0_30, %c0_31] : memref<2x32xf32, #tpu.memory_space<vmem>>, vector<2x32xf32>
      tpu.vector_store %arg10[%c0_30, %c0_31], %46 {strides = array<i32>} : memref<2x32xf32, #tpu.memory_space<vmem>>, vector<2x32xf32>,
      %cst_32 = arith.constant 0xFF800000 : f32
      %48 = vector.broadcast %cst_32 : f32 to vector<1x2xf32>
      %c0_33 = arith.constant 0 : index
      %c0_34 = arith.constant 0 : index
      %49 = vector.load %arg11[%c0_33, %c0_34] : memref<1x2xf32, #tpu.memory_space<vmem>>, vector<1x2xf32>
      tpu.vector_store %arg11[%c0_33, %c0_34], %48 {strides = array<i32>} : memref<1x2xf32, #tpu.memory_space<vmem>>, vector<1x2xf32>,
      %cst_35 = arith.constant 0.000000e+00 : f32
      %50 = vector.broadcast %cst_35 : f32 to vector<1x2xf32>
      %c0_36 = arith.constant 0 : index
      %c0_37 = arith.constant 0 : index
      %51 = vector.load %arg12[%c0_36, %c0_37] : memref<1x2xf32, #tpu.memory_space<vmem>>, vector<1x2xf32>
      tpu.vector_store %arg12[%c0_36, %c0_37], %50 {strides = array<i32>} : memref<1x2xf32, #tpu.memory_space<vmem>>, vector<1x2xf32>,
      %cst_38 = arith.constant 0.000000e+00 : f32
      %52 = vector.broadcast %cst_38 : f32 to vector<2x32xf32>
      %c0_39 = arith.constant 0 : index
      %c0_40 = arith.constant 0 : index
      %53 = vector.load %arg13[%c0_39, %c0_40] : memref<2x32xf32, #tpu.memory_space<vmem>>, vector<2x32xf32>
      tpu.vector_store %arg13[%c0_39, %c0_40], %52 {strides = array<i32>} : memref<2x32xf32, #tpu.memory_space<vmem>>, vector<2x32xf32>,
    } else {
    }
    %c0 = arith.constant 0 : index
    %c0_1 = arith.constant 0 : index
    %c0_2 = arith.constant 0 : index
    %3 = vector.load %arg2[%c0, %c0_1, %c0_2] : memref<8x2x32xbf16, #tpu.memory_space<vmem>>, vector<8x2x32xbf16>
    %4 = arith.extf %3 : vector<8x2x32xbf16> to vector<8x2x32xf32>
    %c0_3 = arith.constant 0 : index
    %c0_4 = arith.constant 0 : index
    %5 = vector.load %arg10[%c0_3, %c0_4] : memref<2x32xf32, #tpu.memory_space<vmem>>, vector<2x32xf32>
    %6 = vector.shape_cast %5 : vector<2x32xf32> to vector<1x2x32xf32>
    %7 = vector.broadcast %6 : vector<1x2x32xf32> to vector<8x2x32xf32>
    %8 = arith.mulf %4, %7 : vector<8x2x32xf32>
    %cst = arith.constant dense<0.000000e+00> : vector<8x2xf32>
    %9 = vector.multi_reduction <add>, %8, %cst [2] : vector<8x2x32xf32> to vector<8x2xf32>
    %c0_5 = arith.constant 0 : index
    %c0_6 = arith.constant 0 : index
    %10 = vector.load %arg4[%c0_5, %c0_6] : memref<8x2xf32, #tpu.memory_space<vmem>>, vector<8x2xf32>
    %cst_7 = arith.constant 0.000000e+00 : f32
    %11 = vector.broadcast %cst_7 : f32 to vector<8x2xf32>
    %12 = arith.cmpf ogt, %10, %11 : vector<8x2xf32>
    %cst_8 = arith.constant -1.000000e+30 : f32
    %13 = vector.broadcast %cst_8 : f32 to vector<8x2xf32>
    %14 = arith.select %12, %9, %13 : vector<8x2xi1>, vector<8x2xf32>
    %c0_9 = arith.constant 0 : index
    %c0_10 = arith.constant 0 : index
    %15 = vector.load %arg11[%c0_9, %c0_10] : memref<1x2xf32, #tpu.memory_space<vmem>>, vector<1x2xf32>
    %cst_11 = arith.constant dense<0xFF800000> : vector<2xf32>
    %16 = vector.multi_reduction <maximumf>, %14, %cst_11 [0] : vector<8x2xf32> to vector<2xf32>
    %17 = vector.shape_cast %16 : vector<2xf32> to vector<1x2xf32>
    %18 = arith.maximumf %15, %17 : vector<1x2xf32>
    %19 = arith.subf %15, %18 : vector<1x2xf32>
    %20 = math.exp %19 : vector<1x2xf32>
    %21 = vector.broadcast %18 : vector<1x2xf32> to vector<8x2xf32>
    %22 = arith.subf %14, %21 : vector<8x2xf32>
    %23 = math.exp %22 : vector<8x2xf32>
    %c0_12 = arith.constant 0 : index
    %c0_13 = arith.constant 0 : index
    %24 = vector.load %arg12[%c0_12, %c0_13] : memref<1x2xf32, #tpu.memory_space<vmem>>, vector<1x2xf32>
    %25 = arith.mulf %20, %24 : vector<1x2xf32>
    %cst_14 = arith.constant dense<0.000000e+00> : vector<2xf32>
    %26 = vector.multi_reduction <add>, %23, %cst_14 [0] : vector<8x2xf32> to vector<2xf32>
    %27 = vector.shape_cast %26 : vector<2xf32> to vector<1x2xf32>
    %28 = arith.addf %25, %27 : vector<1x2xf32>
    %c0_15 = arith.constant 0 : index
    %c0_16 = arith.constant 0 : index
    %29 = vector.load %arg12[%c0_15, %c0_16] : memref<1x2xf32, #tpu.memory_space<vmem>>, vector<1x2xf32>
    tpu.vector_store %arg12[%c0_15, %c0_16], %28 {strides = array<i32>} : memref<1x2xf32, #tpu.memory_space<vmem>>, vector<1x2xf32>,
    %30 = tpu.transpose %20, [1, 0] : vector<1x2xf32> -> vector<2x1xf32>
    %c0_17 = arith.constant 0 : index
    %c0_18 = arith.constant 0 : index
    %31 = vector.load %arg13[%c0_17, %c0_18] : memref<2x32xf32, #tpu.memory_space<vmem>>, vector<2x32xf32>
    %32 = vector.broadcast %30 : vector<2x1xf32> to vector<2x32xf32>
    %33 = arith.mulf %32, %31 : vector<2x32xf32>
    %34 = vector.shape_cast %23 : vector<8x2xf32> to vector<8x2x1xf32>
    %35 = vector.broadcast %34 : vector<8x2x1xf32> to vector<8x2x32xf32>
    %36 = arith.mulf %35, %4 : vector<8x2x32xf32>
    %cst_19 = arith.constant dense<0.000000e+00> : vector<2x32xf32>
    %37 = vector.multi_reduction <add>, %36, %cst_19 [0] : vector<8x2x32xf32> to vector<2x32xf32>
    %38 = arith.addf %33, %37 : vector<2x32xf32>
    %c0_20 = arith.constant 0 : index
    %c0_21 = arith.constant 0 : index
    %39 = vector.load %arg13[%c0_20, %c0_21] : memref<2x32xf32, #tpu.memory_space<vmem>>, vector<2x32xf32>
    tpu.vector_store %arg13[%c0_20, %c0_21], %38 {strides = array<i32>} : memref<2x32xf32, #tpu.memory_space<vmem>>, vector<2x32xf32>,
    %c0_22 = arith.constant 0 : index
    %c0_23 = arith.constant 0 : index
    %40 = vector.load %arg11[%c0_22, %c0_23] : memref<1x2xf32, #tpu.memory_space<vmem>>, vector<1x2xf32>
    tpu.vector_store %arg11[%c0_22, %c0_23], %18 {strides = array<i32>} : memref<1x2xf32, #tpu.memory_space<vmem>>, vector<1x2xf32>,
    %c1_i32 = arith.constant 1 : i32
    %41 = arith.cmpi eq, %arg1, %c1_i32 : i32
    %42 = arith.extui %41 : i1 to i32
    %c0_i32_24 = arith.constant 0 : i32
    %43 = arith.cmpi ne, %42, %c0_i32_24 : i32
    scf.if %43 {
      %c0_25 = arith.constant 0 : index
      %c0_26 = arith.constant 0 : index
      %44 = vector.load %arg12[%c0_25, %c0_26] : memref<1x2xf32, #tpu.memory_space<vmem>>, vector<1x2xf32>
      %45 = tpu.reciprocal %44 {approx = true} : vector<1x2xf32> -> vector<1x2xf32>
      %46 = tpu.transpose %45, [1, 0] : vector<1x2xf32> -> vector<2x1xf32>
      %c0_27 = arith.constant 0 : index
      %c0_28 = arith.constant 0 : index
      %47 = vector.load %arg13[%c0_27, %c0_28] : memref<2x32xf32, #tpu.memory_space<vmem>>, vector<2x32xf32>
      %48 = vector.broadcast %46 : vector<2x1xf32> to vector<2x32xf32>
      %49 = arith.mulf %47, %48 : vector<2x32xf32>
      %c0_29 = arith.constant 0 : index
      %c0_30 = arith.constant 0 : index
      %50 = vector.load %arg6[%c0_29, %c0_30] : memref<32x32xf32, #tpu.memory_space<vmem>>, vector<32x32xf32>
      %cst_31 = arith.constant dense<0.000000e+00> : vector<2x32xf32>
      %51 = tpu.matmul %49, %50, %cst_31 {dimension_numbers = #tpu.dot_dimension_numbers<[1], [0], [0], [1], [0, 0, 1, 1], [], []>} : vector<2x32xf32>, vector<32x32xf32>, vector<2x32xf32> -> vector<2x32xf32>
      %c0_32 = arith.constant 0 : index
      %c0_33 = arith.constant 0 : index
      %52 = vector.load %arg3[%c0_32, %c0_33] : memref<2x32xf32, #tpu.memory_space<vmem>>, vector<2x32xf32>
      %c0_34 = arith.constant 0 : index
      %c0_35 = arith.constant 0 : index
      %53 = vector.load %arg7[%c0_34, %c0_35] : memref<32x32xf32, #tpu.memory_space<vmem>>, vector<32x32xf32>
      %cst_36 = arith.constant dense<0.000000e+00> : vector<2x32xf32>
      %54 = tpu.matmul %52, %53, %cst_36 {dimension_numbers = #tpu.dot_dimension_numbers<[1], [0], [0], [1], [0, 0, 1, 1], [], []>} : vector<2x32xf32>, vector<32x32xf32>, vector<2x32xf32> -> vector<2x32xf32>
      %55 = arith.addf %51, %54 : vector<2x32xf32>
      %c0_37 = arith.constant 0 : index
      %c0_38 = arith.constant 0 : index
      %56 = vector.load %arg8[%c0_37, %c0_38] : memref<1x32xf32, #tpu.memory_space<vmem>>, vector<1x32xf32>
      %57 = vector.broadcast %56 : vector<1x32xf32> to vector<2x32xf32>
      %58 = arith.addf %55, %57 : vector<2x32xf32>
      %59 = math.tanh %58 : vector<2x32xf32>
      %c0_39 = arith.constant 0 : index
      %c0_40 = arith.constant 0 : index
      %60 = vector.load %arg9[%c0_39, %c0_40] : memref<2x32xf32, #tpu.memory_space<vmem>>, vector<2x32xf32>
      tpu.vector_store %arg9[%c0_39, %c0_40], %59 {strides = array<i32>} : memref<2x32xf32, #tpu.memory_space<vmem>>, vector<2x32xf32>,
    } else {
    }
    return
  }
  func.func @transform_0(%arg0: i32, %arg1: i32) -> (i32, i32, i32) {
    %c0_i32 = arith.constant 0 : i32
    %c0_i32_0 = arith.constant 0 : i32
    return %arg1, %arg0, %c0_i32 : i32, i32, i32
  }
  func.func @transform_1(%arg0: i32, %arg1: i32) -> (i32, i32) {
    %c0_i32 = arith.constant 0 : i32
    %c0_i32_0 = arith.constant 0 : i32
    return %arg0, %c0_i32 : i32, i32
  }
  func.func @transform_2(%arg0: i32, %arg1: i32) -> (i32, i32) {
    %c0_i32 = arith.constant 0 : i32
    return %arg1, %arg0 : i32, i32
  }
  func.func @transform_3(%arg0: i32, %arg1: i32) -> (i32, i32) {
    %c0_i32 = arith.constant 0 : i32
    %c0_i32_0 = arith.constant 0 : i32
    %c0_i32_1 = arith.constant 0 : i32
    return %c0_i32, %c0_i32_0 : i32, i32
  }
  func.func @transform_4(%arg0: i32, %arg1: i32) -> (i32, i32) {
    %c0_i32 = arith.constant 0 : i32
    %c0_i32_0 = arith.constant 0 : i32
    %c0_i32_1 = arith.constant 0 : i32
    return %c0_i32, %c0_i32_0 : i32, i32
  }
  func.func @transform_5(%arg0: i32, %arg1: i32) -> (i32, i32) {
    %c0_i32 = arith.constant 0 : i32
    %c0_i32_0 = arith.constant 0 : i32
    %c0_i32_1 = arith.constant 0 : i32
    return %c0_i32, %c0_i32_0 : i32, i32
  }
  func.func @transform_6(%arg0: i32, %arg1: i32) -> (i32, i32) {
    %c0_i32 = arith.constant 0 : i32
    %c0_i32_0 = arith.constant 0 : i32
    %c0_i32_1 = arith.constant 0 : i32
    return %c0_i32, %c0_i32_0 : i32, i32
  }
  func.func @transform_7(%arg0: i32, %arg1: i32) -> (i32, i32) {
    %c0_i32 = arith.constant 0 : i32
    %c0_i32_0 = arith.constant 0 : i32
    return %arg0, %c0_i32 : i32, i32
  }
}

</mosaic_0001>

<bundles_post_ra>
// kernel: tpu_custom_call.1
= control target key start
LH: loop header
LB: loop body
LE: loop exit
PB: predicated region body
PF: predicated region fallthrough
CT: control target
= control target key end

     0   :  { %12 = vsyncpa [#allocation7], 0  ;;  %s1905_s0 = inlined_call_operand.hbm [shape: bf16[16,2,32], index: 0, kind: input, shape index: {}]   ;;  %s1906_s1 = inlined_call_operand.hbm [shape: f32[2,32], index: 1, kind: input, shape index: {}]   ;;  %s1907_s2 = inlined_call_operand.vmem [shape: f32[16,2], index: 2, kind: input, shape index: {}]   ;;  %s1908_s3 = inlined_call_operand.hbm [shape: f32[32,32], index: 3, kind: input, shape index: {}]   ;;  %s1909_s4 = inlined_call_operand.vmem [shape: f32[32,32], index: 4, kind: input, shape index: {}]   ;;  %s1910_s5 = inlined_call_operand.hbm [shape: f32[32,32], index: 5, kind: input, shape index: {}]   ;;  %s1911_s6 = inlined_call_operand.vmem [shape: f32[1,32], index: 6, kind: input, shape index: {}]   ;;  %s1912_s7 = inlined_call_operand.hbm [shape: f32[2,32], index: 7, kind: output, shape index: {}]  }
   0x1   :  { %14 = vsyncpa [#allocation7 + $0x1], 0 }
   0x2   :  { %15 = vsyncpa [#allocation10], 0 }
   0x3   :  { %16 = vsyncpa [#allocation13], 0 }
   0x4   :  { %17 = vsyncpa [#allocation8], 0  ;;  %s1538_s24 = smov 0   ;;  %s1540_s25 = smov 0  }
   0x5   :  { %s1542_s26 = smov 0   ;;  %s1544_s27 = smov 0  }
   0x6   :  { %s1546_s28 = smov 0   ;;  %s1548_s29 = smov 0  }
   0x7 LB: > { %s1917_s30 = sadd.s32 4294967295, %s1478_s29   ;;  %p57_p0 = scmp.ne.s32.totalorder %s1462_s25, %s1458_s24  ;;  %s1478_s29 = sphi %s1548_s29, %s23_s29   ;;  %s1474_s28 = sphi %s1546_s28, %s1933_s28   ;;  %s1470_s27 = sphi %s1544_s27, %s1932_s27   ;;  %s1466_s26 = sphi %s1542_s26, %s1931_s26   ;;  %s1462_s25 = sphi %s1540_s25, %s1930_s25   ;;  %s1458_s24 = sphi %s1538_s24, %s1929_s24  }
   0x8   : > { %p1570_p1 = scmp.eq.s32.totalorder %s1917_s30, 0  ;;  %p1067_p2 = scmp.ge.s32.totalorder %s1478_s29, 1 }
   0x9   : > { %p232_p3 = scmp.lt.s32.totalorder %s1478_s29, 3  ;;  %s1480_s11 = smov [#allocation9]  }
   0xa   : > { %s1918_s8 = scalar_select %p1570_p1, 1, 0 }
   0xb   : > { %p1578_p4 = por %p1570_p1, %p57_p0  ;;  %p1582_p5 = pnand %p1067_p2, %p232_p3 }
   0xc   : > { %s247_s12 = sshll.u32 %s1480_s11, 4  ;;  %s1481_s13 = smov [#allocation11]   ;;  %s248_s12 = int_to_ptr.vmem [resolvable:$true] %s247_s12 }
   0xd   : > { %s1919_s9 = scalar_select %p1578_p4, 1, 0 }
   0xe   : > { %s1920_s10 = scalar_select %p1582_p5, 1, 0 }
   0xf   : > { %p1176_p6 = pneg %p1582_p5  ;;  %s257_s14 = sshll.u32 %s1481_s13, 4  ;;  %s1594_s14 = int_to_ptr.vmem [resolvable:$true] %s257_s14 }
  0x10   : > { %s1482_s16 = smov [#allocation12]   ;;  %s1276_s20 = scalar_lea.hbm %s1906_s1, 32 }
  0x11   : > { %p1590_p7 = pnand %p1176_p6, %p1570_p1  ;;  %s1596_s17 = sshll.u32 %s1482_s16, 4  ;;  %s274_s17 = int_to_ptr.vmem [resolvable:$true] %s1596_s17 }
  0x12   : > { %p1277_p8 = scmp.ne.s32.totalorder %s1906_s1, %s1276_s20  ;;  %p1283_p12 = scmp.lt.u32.totalorder %s1276_s20, %s1906_s1 }
  0x13   : > { %p1606_p9 = pneg %p1590_p7 }
  0x15   : > { %p1279_p10 = pnand %p1606_p9, %p1277_p8 }
  0x17   : > { %p1280_p11 = pneg %p1279_p10 }
  0x19   : > { %p1285_p13 = pnand %p1283_p12, %p1280_p11 }
  0x1b   : > { %1288 = shalt.err (!%p1285_p13)
}
  0x1c   : > { %s1289_s13 = scalar_lea.vmem %s248_s12, 32  ;;  %p1297_p6 = scmp.lt.s32.totalorder %s248_s12, %s248_s12 }
  0x1d   : > { %p1290_p0 = scmp.ne.s32.totalorder %s248_s12, %s1289_s13  ;;  %p1298_p1 = scmp.lt.s32.totalorder %s1289_s13, %s1289_s13 }
  0x1f   : > { %p1292_p2 = pnand %p1290_p0, %p1606_p9  ;;  %p1299_p4 = por %p1298_p1, %p1297_p6 }
  0x21   : > { %p1293_p3 = pneg %p1292_p2 }
  0x23   : > { %p1300_p5 = pnand %p1299_p4, %p1293_p3 }
  0x25   : > { %1303 = shalt.err (!%p1300_p5)
}
  0x26   : > { %1179 = dma.hbm_to_vmem [thread:$0]  (!%p1590_p7), %s1906_s1, 32, %s248_s12, [#allocation10]  }
  0x27   : > { %s1304_s21 = scalar_lea.hbm %s1908_s3, 512 }
  0x28   : > { %p1305_p8 = scmp.ne.s32.totalorder %s1908_s3, %s1304_s21  ;;  %p1311_p4 = scmp.lt.u32.totalorder %s1304_s21, %s1908_s3 }
  0x2a   : > { %p1307_p10 = pnand %p1305_p8, %p1606_p9 }
  0x2c   : > { %p1308_p1 = pneg %p1307_p10 }
  0x2e   : > { %p1313_p5 = pnand %p1311_p4, %p1308_p1 }
  0x30   : > { %1316 = shalt.err (!%p1313_p5)
}
  0x31   : > { %s1317_s12 = scalar_lea.vmem %s1594_s14, 512  ;;  %p1325_p0 = scmp.lt.s32.totalorder %s1594_s14, %s1594_s14 }
  0x32   : > { %p1318_p11 = scmp.ne.s32.totalorder %s1594_s14, %s1317_s12  ;;  %p1326_p2 = scmp.lt.s32.totalorder %s1317_s12, %s1317_s12 }
  0x34   : > { %p1320_p12 = pnand %p1318_p11, %p1606_p9  ;;  %p1327_p3 = por %p1326_p2, %p1325_p0 }
  0x36   : > { %p1321_p13 = pneg %p1320_p12 }
  0x38   : > { %p1328_p6 = pnand %p1327_p3, %p1321_p13 }
  0x3a   : > { %1331 = shalt.err (!%p1328_p6)
}
  0x3b   : > { %s1483_s16 = smov 128   ;;  %s1484_s18 = smov 8  }
  0x3c   : > { %1182 = dma.hbm_to_vmem [thread:$0]  (!%p1590_p7), %s1908_s3, 512, %s1594_s14, [#allocation10], %s1483_s16, %s1483_s16, %s1484_s18  }
  0x3d   : > { %s1332_s24 = scalar_lea.hbm %s1910_s5, 512 }
  0x3e   : > { %p1333_p8 = scmp.ne.s32.totalorder %s1910_s5, %s1332_s24  ;;  %p1339_p4 = scmp.lt.u32.totalorder %s1332_s24, %s1910_s5 }
  0x40   : > { %p1335_p10 = pnand %p1333_p8, %p1606_p9 }
  0x42   : > { %p1336_p1 = pneg %p1335_p10 }
  0x44   : > { %p1341_p5 = pnand %p1339_p4, %p1336_p1 }
  0x46   : > { %1344 = shalt.err (!%p1341_p5)
}
  0x47   : > { %s1345_s19 = scalar_lea.vmem %s274_s17, 512  ;;  %p1353_p0 = scmp.lt.s32.totalorder %s274_s17, %s274_s17 }
  0x48   : > { %p1346_p11 = scmp.ne.s32.totalorder %s274_s17, %s1345_s19  ;;  %p1354_p2 = scmp.lt.s32.totalorder %s1345_s19, %s1345_s19 }
  0x4a   : > { %p1348_p12 = pnand %p1346_p11, %p1606_p9  ;;  %p1355_p3 = por %p1354_p2, %p1353_p0 }
  0x4c   : > { %p1349_p13 = pneg %p1348_p12 }
  0x4e   : > { %p1356_p6 = pnand %p1355_p3, %p1349_p13 }
  0x50   : > { %1359 = shalt.err (!%p1356_p6)
}
  0x51   : > { %1185 = dma.hbm_to_vmem [thread:$0]  (!%p1590_p7), %s1910_s5, 512, %s274_s17, [#allocation13], %s1483_s16, %s1483_s16, %s1484_s18  }
  0x52   : > { %s44_s30 = sadd.s32 1, %s1466_s26  ;;  %s32_s23 = sadd.s32 1, %s1474_s28 }
  0x53   : > { %p51_p9 = scmp.ne.s32.totalorder %s1466_s26, %s1462_s25  ;;  %p33_p8 = scmp.ge.s32.totalorder %s32_s23, 2 }
  0x54   : > { %p52_p10 = scmp.eq.s32.totalorder %s1478_s29, 0  ;;  %p1193_p1 = scmp.lt.s32.totalorder %s1478_s29, 2 }
  0x55   : > { %s290_s15 = sand.u32 1, %s1466_s26   ;;  %s1935_s23 = smov (%p33_p8, %s32_s23), 0 }
  0x56   : > { %p53_p4 = por %p52_p10, %p51_p9  ;;  %s39_s21 = ssub.s32 %s1474_s28, %s1935_s23 }
  0x57   : > { %s1072_s22 = sshll.u32 %s290_s15, 3  ;;  %p42_p5 = scmp.eq.s32.totalorder %s39_s21, 0 }
  0x58   : > { %s1091_s24 = sshll.u32 %s1474_s28, 7  ;;  %s294_s11 = scalar_lea.vmem [#allocation6], %s1072_s22 }
  0x59   : > { %s302_s13 = sshll.u32 %s294_s11, 4  ;;  %s1682_s12 = scalar_lea.hbm %s1905_s0, %s1091_s24  ;;  %s1684_s13 = int_to_ptr.vmem [resolvable:$true] %s302_s13 }
  0x5a   : > { %s1677_s17 = scalar_select %p42_p5, %s1466_s26, %s44_s30  }
  0x5b   : > { %p1688_p7 = pnand %p1193_p1, %p53_p4  ;;  %s1692_s14 = scalar_lea.sflag [#allocation7], %s290_s15 }
  0x5c   : > { %s1360_s20 = scalar_lea.hbm %s1682_s12, 128  ;;  %s1365_s22 = scalar_lea.hbm %s1905_s0, 256 }
  0x5d   : > { %p1361_p11 = scmp.ne.s32.totalorder %s1682_s12, %s1360_s20  ;;  %p1362_p12 = pneg %p1688_p7 }
  0x5e   : > { %p1366_p2 = scmp.lt.u32.totalorder %s1682_s12, %s1905_s0  ;;  %p1367_p3 = scmp.lt.u32.totalorder %s1365_s22, %s1360_s20 }
  0x5f   : > { %p1363_p13 = pnand %p1362_p12, %p1361_p11  ;;  %p1369_p9 = scmp.lt.u32.totalorder %s1360_s20, %s1682_s12 }
  0x60   : > { %p1368_p6 = por %p1367_p3, %p1366_p2 }
  0x61   : > { %p1364_p0 = pneg %p1363_p13 }
  0x62   : > { %p1370_p8 = por %p1369_p9, %p1368_p6 }
  0x64   : > { %p1371_p10 = pnand %p1370_p8, %p1364_p0 }
  0x66   : > { %1374 = shalt.err (!%p1371_p10)
}
  0x67   : > { %s1375_s15 = scalar_lea.vmem %s1684_s13, 128  ;;  %s1485_s16 = smov [#allocation6]  }
  0x68   : > { %p1376_p1 = scmp.ne.s32.totalorder %s1684_s13, %s1375_s15  ;;  %s1380_s18 = sshll.u32 %s1485_s16, 4  ;;  %s1381_s18 = int_to_ptr.vmem [resolvable:$false] %s1380_s18 }
  0x69   : > { %s1382_s30 = scalar_lea.vmem %s1381_s18, 256  ;;  %p1383_p11 = scmp.lt.s32.totalorder %s1684_s13, %s1381_s18 }
  0x6a   : > { %p1378_p4 = pnand %p1376_p1, %p1362_p12  ;;  %p1384_p13 = scmp.lt.s32.totalorder %s1382_s30, %s1375_s15 }
  0x6c   : > { %p1379_p5 = pneg %p1378_p4  ;;  %p1385_p2 = por %p1384_p13, %p1383_p11 }
  0x6e   : > { %p1386_p3 = pnand %p1385_p2, %p1379_p5 }
  0x70   : > { %1389 = shalt.err (!%p1386_p3)
}
  0x71   : > { %s1486_s20 = smov 16   ;;  %s1487_s21 = smov 1  }
  0x72   : > { %1189 = dma.hbm_to_vmem [thread:$0]  (!%p1688_p7), %s1682_s12, 128, %s1684_s13, %s1692_s14, %s1486_s20, %s1486_s20, %s1487_s21  }
  0x73   : > { %p1924_p12 = scmp.ne.s32.totalorder %s1920_s10, 0 }
  0x74   : > { %s326_s22 = sand.u32 (!%p1924_p12), 1, %s1462_s25   ;;  %p1925_p0 = scmp.ne.s32.totalorder (!%p1924_p12), %s1919_s9, 0 }
  0x75   : > { %324 = sbr.rel (%p1924_p12) target bundleno = 1223 (0x4c7), region = 48  ;;  %s1076_s24 = sshll.u32 (!%p1924_p12), %s326_s22, 3 }
  0x76   : > { %s327_s11 = scalar_lea.sflag (!%p1924_p12), [#allocation7], %s326_s22  ;;  %s1723_s15 = scalar_lea.vmem (!%p1924_p12), [#allocation6], %s1076_s24 }
  0x7c   : > { %1441 = dma.done.wait (%p1925_p0), %s327_s11, 128  }
  0x7d   : > { %1443 = vsyncadd (%p1925_p0), %s327_s11, 4294967168  ;;  %p1926_p6 = scmp.ne.s32.totalorder %s1918_s8, 0 }
  0x7f   : > { %1445 = dma.done.wait (%p1926_p6), [#allocation10], 544  }
  0x80   : > { %1447 = vsyncadd (%p1926_p6), [#allocation10], 4294966752 }
  0x81   : > { %1449 = dma.done.wait (%p1926_p6), [#allocation13], 512  }
  0x82   : > { %1451 = vsyncadd (%p1926_p6), [#allocation13], 4294966784  ;;  %p376_p7 = scmp.lt.s32.totalorder %s1470_s27, 1  ;;  %p1081_p9 = scmp.ne.s32.totalorder %s1470_s27, 0 }
  0x83   : > { %v388_v0 = vld [vmem:[#allocation11] sm:$0xff] (!%p1081_p9)  ;;  %v389_v1 = vld [vmem:[#allocation11 + $0x8] sm:$0xff] (!%p1081_p9)  ;;  %v390_v2 = vld [vmem:[#allocation11 + $0x10] sm:$0xff] (!%p1081_p9)  ;;  %v1488_v3 = vmov (!%p1081_p9), 0.0|0.0   ;;  %vm1489_vm0 = vmmov (!%p1081_p9), 0   ;;  %v1490_v6 = vmov (!%p1081_p9), 0.0  }
  0x84   : > { %s377_s10 = scalar_select %p376_p7, %s1470_s27, 1 }
  0x85   : > { %386 = sbr.rel (%p1081_p9) target bundleno = 355 (0x163), region = 68  ;;  %1140 = vmatprep.subr.bf16.mxu0 (!%p1081_p9), %v1488_v3  ;;  %v1141_v4 = vpack.c.bf16 (!%p1081_p9), %v389_v1, %v388_v0  ;;  %v391_v5 = vld [vmem:[#allocation11 + $0x18] sm:$0xff] (!%p1081_p9)  ;;  %1115 = vmatprep.mubr.msk.f32.mxu0 (!%p1081_p9), %vm1489_vm0, %v1490_v6  ;;  %vm468_vm1 = vcmask (!%p1081_p9), 8192   ;;  %v1491_v7 = vmov (!%p1081_p9), -inf   ;;  %vm392_vm2 = vcmask (!%p1081_p9), 261120  }
  0x86   : > { %s1080_s13 = sshll.u32 %s377_s10, 3  ;;  %469 = vst.msk [vmem:[#allocation3] sm:$0x1] (!%p1081_p9), %vm468_vm1, %v1491_v7  ;;  %470 = vst.msk [vmem:[#allocation4] sm:$0x1] (!%p1081_p9), %vm468_vm1, %v1490_v6  ;;  %v1144_v8 = vpack.c.bf16 (!%p1081_p9), %v391_v5, %v390_v2  ;;  %vm466_vm3 = vcmask (!%p1081_p9), 254976  }
  0x87   : > { %s1742_s19 = scalar_lea.vmem %s1907_s2, %s1080_s13  ;;  %1142 = vmatpush3.bf16.msra.mxu0 (!%p1081_p9), %v1141_v4  ;;  %v387_v9 = vld [vmem:[#allocation9] sm:$0x3] (!%p1081_p9)  ;;  %471 = vst.msk [vmem:[#allocation5] sm:$0x3] (!%p1081_p9), %vm466_vm3, %v1490_v6 }
  0x88   : > { %1143 = vmatprep.subr.bf16.mxu0 (!%p1081_p9), %v1488_v3 }
  0x8b   : > { %1145 = vmatpush3.bf16.msra.mxu0 (!%p1081_p9), %v1144_v8 }
  0x8e   : > { %1116 = vmatmul.mubr.msk.f32.vlgmr.msra.gmra.mrb[0].mxu0 %vm392_vm2, %v387_v9 }
 0x161   : > { %v462_v10 = vpop.f32.mrb[0].mxu0 }
 0x162   : > { %467 = vst.msk [vmem:[#allocation2] sm:$0x3] %vm466_vm3, %v462_v10  ;;  %v1117_v11 = vpop.f32.mrb[1].mxu0 }
 0x163 PF: > { %v1746_v12 = vld [vmem:[%s1723_s15] sm:$0x1]  ;;  %v1750_v15 = vld [vmem:[%s1723_s15 + $0x2] sm:$0x1]  ;;  %v1753_v16 = vld [vmem:[%s1723_s15 + $0x1] sm:$0x1]  ;;  %v532_v45 = vlaneseq }
 0x164   : > { %v480_v14 = vunpack.c.l.bf16 %v1746_v12  ;;  %v1756_v17 = vld [vmem:[%s1723_s15 + $0x3] sm:$0x1]  ;;  %vm497_vm4 = vcmask 254976   ;;  %v482_v18 = vunpack.c.l.bf16 %v1750_v15  ;;  %v481_v19 = vunpack.c.l.bf16 %v1753_v16  ;;  %v1762_v21 = vld [vmem:[%s1723_s15 + $0x4] sm:$0x1]  ;;  %v522_v1 = vld [vmem:[%s1742_s19] sm:$0xff] }
 0x165   : > { %v483_v20 = vunpack.c.l.bf16 %v1756_v17  ;;  %v1765_v22 = vld [vmem:[%s1723_s15 + $0x5] sm:$0x1]  ;;  %v484_v24 = vunpack.c.l.bf16 %v1762_v21  ;;  %v1778_v29 = vld [vmem:[%s1723_s15 + $0x6] sm:$0x1]  ;;  %v1782_v31 = vld [vmem:[%s1723_s15 + $0x7] sm:$0x1] }
 0x166   : > { %v485_v28 = vunpack.c.l.bf16 %v1765_v22  ;;  %v486_v35 = vunpack.c.l.bf16 %v1778_v29  ;;  %v487_v38 = vunpack.c.l.bf16 %v1782_v31  ;;  %v533_v46 = vand.u32 127, %v532_v45  ;;  %p1083_p8 = scmp.ne.s32.totalorder %s1470_s27, 1 }
 0x167   : > { %v1801_v47 = vshrl.u32 %v532_v45, 7  ;;  %vm566_vm5 = vcmask 1041409   ;;  %vm568_vm6 = vcmask 1042434   ;;  %vm570_vm7 = vcmask 1043459   ;;  %v787_v29 = vld [vmem:[#allocation12] sm:$0xff] (!%p1083_p8) }
 0x168   : > { %vm572_vm8 = vcmask 1044484   ;;  %vm574_vm9 = vcmask 1045509   ;;  %vm576_vm10 = vcmask 1046534   ;;  %vm578_vm11 = vcmask 1047559  }
 0x169   : > { %v488_v13 = vld [vmem:[#allocation2] sm:$0x3]  ;;  %v536_v49 = vsub.s32 %v533_v46, %v1801_v47  ;;  %vm523_vm12 = vcmp.gt.f32.partialorder %v522_v1, 0.0  ;;  %vm583_vm13 = vcmask 15360   ;;  %vm614_vm14 = vcmask 8192  }
 0x16a   : > { %v489_v23 = vmul.f32 %v488_v13, %v480_v14  ;;  %v491_v25 = vmul.f32 %v488_v13, %v482_v18  ;;  %v490_v26 = vmul.f32 %v488_v13, %v481_v19  ;;  %v492_v27 = vmul.f32 %v488_v13, %v483_v20 }
 0x16b   : > { %v493_v34 = vmul.f32 %v488_v13, %v484_v24  ;;  %v494_v37 = vmul.f32 %v488_v13, %v485_v28  ;;  %v495_v40 = vmul.f32 %v488_v13, %v486_v35  ;;  %v496_v42 = vmul.f32 %v488_v13, %v487_v38 }
 0x16c   : > { %v498_v30 = vsel %vm497_vm4, %v489_v23, 0.0  ;;  %v504_v32 = vsel %vm497_vm4, %v491_v25, 0.0  ;;  %v501_v33 = vsel %vm497_vm4, %v490_v26, 0.0  ;;  %v507_v36 = vsel %vm497_vm4, %v492_v27, 0.0  ;;  %v582_v27 = vld [vmem:[#allocation3] sm:$0x1] }
 0x16d   : > { %499 = vadd.xlane.f32.xlu0 %v498_v30  ;;  %505 = vadd.xlane.f32.xlu1 %v504_v32  ;;  %v510_v39 = vsel %vm497_vm4, %v493_v34, 0.0  ;;  %v513_v41 = vsel %vm497_vm4, %v494_v37, 0.0  ;;  %v516_v43 = vsel %vm497_vm4, %v495_v40, 0.0  ;;  %v519_v44 = vsel %vm497_vm4, %v496_v42, 0.0 }
 0x16e   : > { %v598_v32 = vsub.s32 0, %v1801_v47  ;;  %v699_v42 = vsub.s32 6, %v1801_v47  ;;  %v664_v46 = vsub.s32 1, %v1801_v47  ;;  %vm1495_vm15 = vmmov (!%p1083_p8), 0  }
 0x16f   : > { %vm791_vm0 = vcmask (!%p1083_p8), 261120  }
 0x171   : > { %502 = vadd.xlane.f32.xlu0 %v501_v33  ;;  %508 = vadd.xlane.f32.xlu1 %v507_v36 }
 0x175   : > { %511 = vadd.xlane.f32.xlu0 %v510_v39  ;;  %514 = vadd.xlane.f32.xlu1 %v513_v41 }
 0x179   : > { %517 = vadd.xlane.f32.xlu0 %v516_v43  ;;  %520 = vadd.xlane.f32.xlu1 %v519_v44 }
 0x1fa   : > { %v500_v48 = vpop.xlane.xlu0 %499  ;;  %v506_v50 = vpop.xlane.xlu1 %505 }
 0x1fb   : > { %v537_v52 = vrot.slane %v500_v48, %v536_v49  ;;  %v545_v55 = vrot.slane %v506_v50, %v536_v49  ;;  %v1492_v48 = vmov 0  }
 0x1fc   : > { %1265 = vset.pattern.permute.xlu1 %v1492_v48 }
 0x1fe   : > { %v503_v51 = vpop.xlane.xlu0 %502  ;;  %v509_v54 = vpop.xlane.xlu1 %508 }
 0x1ff   : > { %v541_v53 = vrot.slane %v503_v51, %v536_v49  ;;  %v549_v56 = vrot.slane %v509_v54, %v536_v49 }
 0x201   : > { %v567_v57 = vsel %vm566_vm5, %v541_v53, %v537_v52  ;;  %v671_v53 = vsub.s32 2, %v1801_v47 }
 0x202   : > { %v569_v58 = vsel %vm568_vm6, %v545_v55, %v567_v57  ;;  %v512_v59 = vpop.xlane.xlu0 %511  ;;  %v515_v62 = vpop.xlane.xlu1 %514 }
 0x203   : > { %v571_v60 = vsel %vm570_vm7, %v549_v56, %v569_v58  ;;  %v553_v61 = vrot.slane %v512_v59, %v536_v49  ;;  %v557_v63 = vrot.slane %v515_v62, %v536_v49  ;;  %v604_v56 = vld [vmem:[#allocation4] sm:$0x1]  ;;  %v678_v58 = vsub.s32 3, %v1801_v47 }
 0x205   : > { %v573_v0 = vsel %vm572_vm8, %v553_v61, %v571_v60 }
 0x206   : > { %v518_v2 = vpop.xlane.xlu0 %517  ;;  %v521_v4 = vpop.xlane.xlu1 %520  ;;  %v575_v5 = vsel %vm574_vm9, %v557_v63, %v573_v0  ;;  %v685_v63 = vsub.s32 4, %v1801_v47 }
 0x207   : > { %v561_v3 = vrot.slane %v518_v2, %v536_v49  ;;  %v565_v6 = vrot.slane %v521_v4, %v536_v49  ;;  %v692_v2 = vsub.s32 5, %v1801_v47  ;;  %v706_v4 = vsub.s32 7, %v1801_v47 }
 0x209   : > { %v577_v7 = vsel %vm576_vm10, %v561_v3, %v575_v5 }
 0x20a   : > { %v579_v8 = vsel %vm578_vm11, %v565_v6, %v577_v7 }
 0x20b   : > { %v581_v9 = vsel %vm523_vm12, %v579_v8, -1e+30 }
 0x20c   : > { %v584_v10 = vsel %vm583_vm13, %v581_v9, -inf }
 0x20d   : > { %v585_v11 = vrot.slane %v584_v10, 4 }
 0x20f   : > { %v586_v13 = vmax.f32 %v584_v10, %v585_v11 }
 0x211   : > { %v587_v23 = vrot.slane %v586_v13, 2 }
 0x213   : > { %v588_v25 = vmax.f32 %v586_v13, %v587_v23 }
 0x215   : > { %v589_v26 = vrot.slane %v588_v25, 1 }
 0x217   : > { %v590_v30 = vmax.f32 %v588_v25, %v589_v26 }
 0x219   : > { %v591_v33 = vmax.f32 %v582_v27, %v590_v30 }
 0x21b   : > { %v592_v34 = vsub.f32 %v582_v27, %v591_v33  ;;  %736 = vst.msk [vmem:[#allocation3] sm:$0x1] %vm614_vm14, %v591_v33  ;;  %v599_v36 = vrot.slane %v591_v33, %v598_v32 }
 0x21d   : > { %v593_v37 = vmul.f32 1.442695, %v592_v34  ;;  %v601_v39 = vsub.f32 %v581_v9, %v599_v36 }
 0x21f   : > { %1267 = vpow2.f32 %v593_v37  ;;  %v602_v40 = vmul.f32 1.442695, %v601_v39 }
 0x221   : > { %1269 = vpow2.f32 %v602_v40  ;;  %v648_v40 = vld [vmem:[#allocation5] sm:$0x3] }
 0x229   : > { %v1268_v41 = vpop.eup %1267 }
 0x22a   : > { %616 = vxpose.xlu0.b32.start.end [1/1] (short) (narrow) %v1268_v41, 8  ;;  %v605_v60 = vmul.f32 %v1268_v41, %v604_v56 }
 0x22b   : > { %v1270_v43 = vpop.eup %1269 }
 0x22c   : > { %v658_v44 = vrot.slane %v1270_v43, %v598_v32  ;;  %v606_v45 = vsel %vm583_vm13, %v1270_v43, 0.0  ;;  %v700_v50 = vrot.slane %v1270_v43, %v699_v42  ;;  %v665_v52 = vrot.slane %v1270_v43, %v664_v46 }
 0x22d   : > { %v607_v49 = vrot.slane %v606_v45, 4  ;;  %v672_v57 = vrot.slane %v1270_v43, %v671_v53  ;;  %v679_v62 = vrot.slane %v1270_v43, %v678_v58  ;;  %v686_v1 = vrot.slane %v1270_v43, %v685_v63  ;;  %v784_v53 = vld [vmem:[%s1909_s4 + $0x10] sm:$0xff] (!%p1083_p8) }
 0x22e   : > { %660 = vbcast.lane.b32.xlu1 %v658_v44, 256  ;;  %v693_v3 = vrot.slane %v1270_v43, %v692_v2  ;;  %v707_v5 = vrot.slane %v1270_v43, %v706_v4  ;;  %v1493_v46 = vmov (!%p1083_p8), 0.0|0.0  }
 0x22f   : > { %v608_v51 = vadd.f32 %v607_v49, %v606_v45  ;;  %v782_v45 = vld [vmem:[%s1909_s4] sm:$0xff] (!%p1083_p8)  ;;  %1146 = vmatprep.subr.bf16.mxu0 (!%p1083_p8), %v1493_v46  ;;  %1152 = vmatprep.subr.bf16.mxu1 (!%p1083_p8), %v1493_v46  ;;  %v783_v49 = vld [vmem:[%s1909_s4 + $0x8] sm:$0xff] (!%p1083_p8) }
 0x231   : > { %v609_v54 = vrot.slane %v608_v51, 2 }
 0x232   : > { %667 = vbcast.lane.b32.xlu1 %v665_v52, 256  ;;  %v1153_v52 = vpack.c.bf16 (!%p1083_p8), %v783_v49, %v782_v45 }
 0x233   : > { %v610_v55 = vadd.f32 %v609_v54, %v608_v51  ;;  %v790_v51 = vld [vmem:[#allocation12 + $0x18] sm:$0xff] (!%p1083_p8)  ;;  %v785_v54 = vld [vmem:[%s1909_s4 + $0x18] sm:$0xff] (!%p1083_p8) }
 0x234   : > { %1154 = vmatpush3.bf16.msra.mxu1 (!%p1083_p8), %v1153_v52  ;;  %v1156_v56 = vpack.c.bf16 (!%p1083_p8), %v785_v54, %v784_v53 }
 0x235   : > { %v611_v59 = vrot.slane %v610_v55, 1  ;;  %1155 = vmatprep.subr.bf16.mxu1 (!%p1083_p8), %v1493_v46 }
 0x236   : > { %674 = vbcast.lane.b32.xlu1 %v672_v57, 256  ;;  %v1494_v57 = vmov (!%p1083_p8), 0  }
 0x237   : > { %v612_v61 = vadd.f32 %v611_v59, %v610_v55  ;;  %v1496_v59 = vmov (!%p1083_p8), 0.0  }
 0x238   : > { %1157 = vmatpush3.bf16.msra.mxu1 (!%p1083_p8), %v1156_v56  ;;  %1126 = vmatprep.mubr.msk.f32.mxu0 (!%p1083_p8), %vm1495_vm15, %v1496_v59 }
 0x239   : > { %v613_v0 = vadd.f32 %v612_v61, %v605_v60  ;;  %v786_v60 = vld [vmem:[#allocation9] sm:$0x3] (!%p1083_p8)  ;;  %1137 = vmatprep.mubr.msk.f32.mxu1 (!%p1083_p8), %vm1495_vm15, %v1496_v59 }
 0x23a   : > { %681 = vbcast.lane.b32.xlu1 %v679_v62, 256 }
 0x23b   : > { %615 = vst.msk [vmem:[#allocation4] sm:$0x1] %vm614_vm14, %v613_v0 }
 0x23e   : > { %688 = vbcast.lane.b32.xlu1 %v686_v1, 256 }
 0x242   : > { %695 = vbcast.lane.b32.xlu1 %v693_v3, 256  ;;  %v741_v31 = vld [vmem:[#allocation4] sm:$0x1] (!%p1083_p8)  ;;  %v1086_v3 = vld [vmem:[%s1911_s6] ss:$0 sm:$0xff] (!%p1083_p8) }
 0x243   : > { %1272 = vrcp.f32 (!%p1083_p8), %v741_v31 }
 0x253   : > { %709 = vbcast.lane.b32.xlu0 %v707_v5, 256 }
 0x254   : > { %1266 = vset.pattern.permute.xlu0 %v1492_v48 }
 0x2a0   : > { %v661_v7 = vpop.permute.xlu1 %660 }
 0x2a1   : > { %v711_v23 = vmul.f32 %v661_v7, %v480_v14 }
 0x2a3   : > { %v719_v30 = vsel %vm497_vm4, %v711_v23, 0.0 }
 0x2a4   : > { %v668_v8 = vpop.permute.xlu1 %667 }
 0x2a5   : > { %v712_v13 = vmul.f32 %v668_v8, %v481_v19 }
 0x2a7   : > { %v720_v25 = vsel %vm497_vm4, %v712_v13, 0.0 }
 0x2a8   : > { %v675_v9 = vpop.permute.xlu1 %674  ;;  %v721_v19 = vadd.f32 %v720_v25, %v719_v30 }
 0x2a9   : > { %v713_v47 = vmul.f32 %v675_v9, %v482_v18 }
 0x2aa   : > { %v632_v6 = vpop.trf.xlu0 }
 0x2ab   : > { %651 = vperm.xlu1 %1265, %v632_v6   ;;  %v722_v32 = vsel %vm497_vm4, %v713_v47, 0.0 }
 0x2ac   : > { %v682_v10 = vpop.permute.xlu1 %681  ;;  %v723_v15 = vadd.f32 %v722_v32, %v721_v19 }
 0x2ad   : > { %v714_v26 = vmul.f32 %v682_v10, %v483_v20 }
 0x2af   : > { %702 = vbcast.lane.b32.xlu1 %v700_v50, 256  ;;  %v724_v12 = vsel %vm497_vm4, %v714_v26, 0.0  ;;  %v789_v50 = vld [vmem:[#allocation12 + $0x10] sm:$0xff] (!%p1083_p8) }
 0x2b0   : > { %v689_v11 = vpop.permute.xlu1 %688  ;;  %v725_v17 = vadd.f32 %v724_v12, %v723_v15  ;;  %v1150_v55 = vpack.c.bf16 (!%p1083_p8), %v790_v51, %v789_v50 }
 0x2b1   : > { %v715_v16 = vmul.f32 %v689_v11, %v484_v24 }
 0x2b3   : > { %v726_v33 = vsel %vm497_vm4, %v715_v16, 0.0 }
 0x2b4   : > { %v696_v27 = vpop.permute.xlu1 %695  ;;  %v727_v36 = vadd.f32 %v726_v33, %v725_v17 }
 0x2b5   : > { %v716_v14 = vmul.f32 %v696_v27, %v485_v28 }
 0x2b7   : > { %v728_v34 = vsel %vm497_vm4, %v716_v14, 0.0 }
 0x2b8   : > { %v729_v39 = vadd.f32 %v728_v34, %v727_v36 }
 0x2c5   : > { %v710_v20 = vpop.permute.xlu0 %709 }
 0x2c6   : > { %v718_v21 = vmul.f32 %v710_v20, %v487_v38  ;;  %v1273_v38 = vpop.eup (!%p1083_p8), %1272 }
 0x2c7   : > { %743 = vxpose.xlu0.b32.start.end [1/1] (short) (narrow) (!%p1083_p8), %v1273_v38, 8 }
 0x2c8   : > { %v732_v41 = vsel %vm497_vm4, %v718_v21, 0.0 }
 0x2f0   : > { %1271 = vset.pattern.permute.xlu0 (!%p1083_p8), %v1494_v57 }
 0x32a   : > { %v652_v18 = vpop.permute.xlu1 %651 }
 0x32b   : > { %v654_v42 = vmul.f32 %v652_v18, %v648_v40 }
 0x32e   : > { %v703_v37 = vpop.permute.xlu1 %702 }
 0x32f   : > { %v717_v24 = vmul.f32 %v703_v37, %v486_v35  ;;  %v788_v35 = vld [vmem:[#allocation12 + $0x8] sm:$0xff] (!%p1083_p8) }
 0x330   : > { %v1147_v48 = vpack.c.bf16 (!%p1083_p8), %v788_v35, %v787_v29 }
 0x331   : > { %v730_v22 = vsel %vm497_vm4, %v717_v24, 0.0 }
 0x332   : > { %v731_v28 = vadd.f32 %v730_v22, %v729_v39  ;;  %740 = sbr.rel (%p1083_p8) target bundleno = 1198 (0x4ae), region = 72  ;;  %1148 = vmatpush3.bf16.msra.mxu0 (!%p1083_p8), %v1147_v48 }
 0x333   : > { %1149 = vmatprep.subr.bf16.mxu0 (!%p1083_p8), %v1493_v46 }
 0x334   : > { %v733_v43 = vadd.f32 %v732_v41, %v731_v28 }
 0x336   : > { %v734_v44 = vadd.f32 %v733_v43, %v654_v42  ;;  %1151 = vmatpush3.bf16.msra.mxu0 (!%p1083_p8), %v1150_v55 }
 0x338   : > { %735 = vst.msk [vmem:[#allocation5] sm:$0x3] %vm497_vm4, %v734_v44 }
 0x339   : > { %1127 = vmatmul.mubr.msk.f32.vlgmr.msra.gmra.mrb[0].mxu0 %vm791_vm0, %v786_v60 }
 0x33f   : > { %v775_v61 = vld [vmem:[#allocation5] sm:$0x3] }
 0x347   : > { %v759_v58 = vpop.trf.xlu0 }
 0x348   : > { %778 = vperm.xlu0 %1271, %v759_v58  }
 0x3c7   : > { %v779_v62 = vpop.permute.xlu0 %778 }
 0x3c8   : > { %v781_v63 = vmul.f32 %v779_v62, %v775_v61 }
 0x3ca   : > { %1138 = vmatmul.mubr.msk.f32.vlgmr.msra.gmra.mrb[0].mxu1 %vm791_vm0, %v781_v63 }
 0x40c   : > { %v861_v0 = vpop.f32.mrb[0].mxu0 }
 0x40d   : > { %v1128_v1 = vpop.f32.mrb[1].mxu0 }
 0x49d   : > { %v934_v2 = vpop.f32.mrb[0].mxu1 }
 0x49e   : > { %v935_v4 = vadd.f32 %v934_v2, %v861_v0  ;;  %v1139_v5 = vpop.f32.mrb[1].mxu1 }
 0x4a0   : > { %v945_v6 = vadd.f32 %v1086_v3, %v935_v4 }
 0x4a2   : > { %1274 = vtanh.f32 %v945_v6 }
 0x4ac   : > { %v1275_v7 = vpop.eup %1274 }
 0x4ad   : > { %947 = vst.msk [vmem:[#allocation14] sm:$0x3] %vm497_vm4, %v1275_v7 }
 0x4ae PF: > { %s1927_s11 = sadd.s32 4294967295, %s1478_s29   ;;  %s1497_s10 = smov [#allocation14]  }
 0x4af   : > { %p1861_p10 = scmp.eq.s32.totalorder %s1927_s11, 1  ;;  %s957_s13 = sshll.u32 %s1497_s10, 4  ;;  %s958_s13 = int_to_ptr.vmem [resolvable:$true] %s957_s13 }
 0x4b0   : > { %s1390_s12 = scalar_lea.vmem %s958_s13, 32  ;;  %p1397_p11 = scmp.lt.s32.totalorder %s958_s13, %s958_s13 }
 0x4b1   : > { %p1391_p1 = scmp.ne.s32.totalorder %s958_s13, %s1390_s12  ;;  %p1398_p13 = scmp.lt.s32.totalorder %s1390_s12, %s1390_s12 }
 0x4b3   : > { %p1392_p4 = pnand %p1391_p1, %p1861_p10  ;;  %p1399_p2 = por %p1398_p13, %p1397_p11 }
 0x4b5   : > { %p1393_p5 = pneg %p1392_p4 }
 0x4b7   : > { %p1400_p3 = pnand %p1399_p2, %p1393_p5 }
 0x4b9   : > { %1403 = shalt.err (!%p1400_p3)
}
 0x4ba   : > { %s1404_s8 = scalar_lea.hbm %s1912_s7, 32 }
 0x4bb   : > { %p1405_p12 = scmp.ne.s32.totalorder %s1912_s7, %s1404_s8  ;;  %p1410_p7 = scmp.lt.u32.totalorder %s1404_s8, %s1912_s7 }
 0x4bd   : > { %p1406_p0 = pnand %p1405_p12, %p1861_p10 }
 0x4bf   : > { %p1407_p6 = pneg %p1406_p0 }
 0x4c1   : > { %p1412_p9 = pnand %p1410_p7, %p1407_p6 }
 0x4c3   : > { %1415 = shalt.err (!%p1412_p9)
}
 0x4c4   : > { %1173 = dma.vmem_to_hbm [thread:$0]  (%p1861_p10), %s958_s13, 32, %s1912_s7, [#allocation8]  }
 0x4c5   : > { %1453 = dma.done.wait (%p1861_p10), [#allocation8], 32  }
 0x4c6   : > { %1455 = vsyncadd (%p1861_p10), [#allocation8], 4294967264 }
 0x4c7 PF: > { %s23_s29 = sadd.s32 1, %s1478_s29   ;;  %s1929_s24 = smov %s1462_s25 }
 0x4c8   : > { %p20_p8 = scmp.ge.s32.totalorder %s23_s29, 4   ;;  %s1930_s25 = smov %s1466_s26 }
 0x4c9   : > { %s1931_s26 = smov %s1677_s17  ;;  %s1932_s27 = smov %s1474_s28 }
 0x4ca   : > { %s1933_s28 = smov %s1935_s23  ;;  %22 = sbr.rel (!%p20_p8) target bundleno = 7 (0x7), region = 110 }
 0x4d1   :  { %970 = vsyncpa [#allocation7], 1 }
 0x4d2   :  { %972 = vsyncpa [#allocation7 + $0x1], 1 }
 0x4d3   :  { %973 = vsyncpa [#allocation10], 1 }
 0x4d4   :  { %974 = vsyncpa [#allocation13], 1 }
 0x4d5   :  { %975 = vsyncpa [#allocation8], 1 }
 0x4d6   :  { %977 = vsyncpa [#allocation8 + $0x1], 1 }

</bundles_post_ra>
